<compile_context>
chip_gen: v7x
topology: tpu7x:2x2x1
jax: 0.10.0
libtpu: 0.0.40
codegen_flags: <defaults>
</compile_context>

<pallas_src>
import functools

import jax
import jax.numpy as jnp
from jax.experimental import pallas as pl
from jax.experimental.pallas import tpu as pltpu


def _round_up(x: int, m: int) -> int:
    return (x + m - 1) // m * m


# Double-buffered tile footprint budget (fits v7x's 64 MiB physical VMEM with
# headroom; v5e/v6e have 128 MiB) and the scoped-VMEM limit handed to Mosaic.
_VMEM_TILE_BUDGET = 36 * 1024 * 1024
_VMEM_LIMIT_BYTES = 48 * 1024 * 1024


def _combiner_kernel(img_ref, txt_ref, wi_ref, wt_ref, b_ref, out_ref):
    # Fused "concat + Linear": two MXU dots (one per feature half) sharing one
    # f32 accumulator, plus bias.  Identical math to concat([img,txt],1)@W^T+b.
    acc = jnp.dot(img_ref[...], wi_ref[...], preferred_element_type=jnp.float32)
    acc = acc + jnp.dot(txt_ref[...], wt_ref[...],
                        preferred_element_type=jnp.float32)
    acc = acc + b_ref[...]          # f32 bias row, broadcasts over batch rows
    out_ref[...] = acc.astype(out_ref.dtype)


def prepare_combiner_params(weight, bias, vision_feature_dim,
                            param_dtype=jnp.bfloat16):
    """Pack nn.Linear params ONCE (at parameter-init time, not per call).

    weight: [embed_dim, Dv + Dt] (PyTorch nn.Linear layout); bias: [embed_dim].
    Returns (w_img [Dv, E_pad], w_txt [Dt, E_pad], bias f32 [1, E_pad]) with
    E_pad = round_up(embed_dim, 128) so the kernel output is lane-dense.
    bf16 params by default (MXU-native on v5e/v6e/v7x, halves HBM weight
    traffic); pass param_dtype=jnp.float32 for the full-precision path.
    """
    E, K = weight.shape
    Dv = vision_feature_dim
    assert 0 < Dv < K
    e_pad = _round_up(E, 128)
    w_t = jnp.asarray(weight).T.astype(param_dtype)           # [K, E]
    b2d = jnp.asarray(bias).astype(jnp.float32).reshape(1, E)
    if e_pad != E:
        w_t = jnp.pad(w_t, ((0, 0), (0, e_pad - E)))
        b2d = jnp.pad(b2d, ((0, 0), (0, e_pad - E)))
    return w_t[:Dv], w_t[Dv:], b2d


def _choose_tiles(B, K, e_pad, act_bytes, w_bytes, out_bytes):
    """Derive (tm, tn, b_pad) from a double-buffered VMEM budget."""
    row_mult = 16 if min(act_bytes, out_bytes) <= 2 else 8  # bf16 packs 16 rows

    if B <= 1024:
        tm, b_pad = B, B            # single batch tile: no batch-padding pass
    else:
        tm = 512
        b_pad = _round_up(B, tm)

    def footprint(tm_, tn_):        # double-buffered inputs + output + bias
        return (2 * (tm_ * K * act_bytes + K * tn_ * w_bytes
                     + tm_ * tn_ * out_bytes) + 2 * tn_ * 4)

    # Biggest 128-multiple divisor of e_pad whose footprint fits the budget.
    tn = 128
    for cand in range(e_pad, 127, -128):
        if e_pad % cand == 0 and footprint(tm, cand) <= _VMEM_TILE_BUDGET:
            tn = cand
            break
    # If even the minimum embed tile is over budget, shrink the batch tile.
    while footprint(tm, tn) > _VMEM_TILE_BUDGET and tm > row_mult:
        tm = max(row_mult, _round_up(tm // 2, row_mult))
        b_pad = _round_up(B, tm)
    # Keep >=2 blocks on a parallel axis so both v7x TensorCores get work.
    if b_pad // tm == 1 and e_pad // tn == 1 and e_pad >= 256:
        for cand in range(e_pad // 2, 127, -128):
            if e_pad % cand == 0:
                tn = cand
                break
    return tm, tn, b_pad


@functools.partial(jax.jit, static_argnames=("embed_dim",))
def combiner_forward(image_features, text_features, w_img, w_txt, b2d, *,
                     embed_dim):
    """image_features: [B, Dv], text_features: [B, Dt],
    (w_img, w_txt, b2d): output of prepare_combiner_params.
    Returns [B, embed_dim]."""
    B, Dv = image_features.shape
    _, Dt = text_features.shape
    K = Dv + Dt
    assert w_img.shape[0] == Dv and w_txt.shape[0] == Dt
    e_pad = w_img.shape[1]
    assert w_txt.shape[1] == e_pad and b2d.shape == (1, e_pad)
    assert e_pad % 128 == 0 and embed_dim <= e_pad

    out_dtype = image_features.dtype
    # Cast activations to the param dtype (bf16 default -> MXU-native operands;
    # accumulation stays f32 inside the kernel).
    img = image_features.astype(w_img.dtype)
    txt = text_features.astype(w_txt.dtype)

    act_bytes = img.dtype.itemsize
    w_bytes = w_img.dtype.itemsize
    out_bytes = jnp.dtype(out_dtype).itemsize
    tm, tn, b_pad = _choose_tiles(B, K, e_pad, act_bytes, w_bytes, out_bytes)
    if b_pad != B:
        img = jnp.pad(img, ((0, b_pad - B), (0, 0)))
        txt = jnp.pad(txt, ((0, b_pad - B), (0, 0)))

    n_b, n_e = b_pad // tm, e_pad // tn
    # Grid order: the operand whose index_map depends ONLY on the outer axis is
    # resident across inner steps (Pallas skips its re-DMA).  Make the weight
    # resident whenever its redundant re-stream traffic would dominate.
    weight_resident = ((n_b - 1) * K * e_pad * w_bytes
                       >= (n_e - 1) * b_pad * K * act_bytes)
    if weight_resident:
        grid = (n_e, n_b)                      # embed outer, batch inner
        act_map = lambda j, i: (i, 0)
        w_map = lambda j, i: (0, j)
        out_map = lambda j, i: (i, j)
    else:
        grid = (n_b, n_e)                      # batch outer, embed inner
        act_map = lambda i, j: (i, 0)
        w_map = lambda i, j: (0, j)
        out_map = lambda i, j: (i, j)

    out = pl.pallas_call(
        _combiner_kernel,
        out_shape=jax.ShapeDtypeStruct((b_pad, e_pad), out_dtype),
        grid_spec=pltpu.PrefetchScalarGridSpec(
            num_scalar_prefetch=0,
            grid=grid,
            in_specs=[
                pl.BlockSpec((tm, Dv), act_map),   # image activations
                pl.BlockSpec((tm, Dt), act_map),   # text activations
                pl.BlockSpec((Dv, tn), w_map),     # W^T (image half), E-blocked
                pl.BlockSpec((Dt, tn), w_map),     # W^T (text half),  E-blocked
                pl.BlockSpec((1, tn), w_map),      # f32 bias row
            ],
            out_specs=pl.BlockSpec((tm, tn), out_map),
        ),
        # Both grid axes independent -> megacore-shardable (2 TCs on v7x);
        # raise scoped VMEM above the low per-generation defaults.
        compiler_params=pltpu.CompilerParams(
            dimension_semantics=("parallel", "parallel"),
            vmem_limit_bytes=_VMEM_LIMIT_BYTES),
    )(img, txt, w_img, w_txt, b2d)

    # Only pay the slice copy when padding was actually added.
    if b_pad != B or e_pad != embed_dim:
        out = out[:B, :embed_dim]
    return out


if __name__ == "__main__":
    # Small shapes consistent with the module's forward.
    B, Dv, Dt, E = 8, 32, 32, 32

    key = jax.random.PRNGKey(0)
    k_img, k_txt, k_w, k_b = jax.random.split(key, 4)
    image_features = jax.random.normal(k_img, (B, Dv), dtype=jnp.float32)
    text_features = jax.random.normal(k_txt, (B, Dt), dtype=jnp.float32)

    # Deterministic nn.Linear-style init: U(-1/sqrt(fan_in), 1/sqrt(fan_in)).
    fan_in = Dv + Dt
    bound = 1.0 / (fan_in ** 0.5)
    weight = jax.random.uniform(k_w, (E, fan_in), minval=-bound, maxval=bound,
                                dtype=jnp.float32)
    bias = jax.random.uniform(k_b, (E,), minval=-bound, maxval=bound,
                              dtype=jnp.float32)

    # ---- default path: bf16 operands / f32 accumulation (MXU-native) ----
    w_img, w_txt, b2d = prepare_combiner_params(weight, bias, Dv)  # bf16 default
    out16 = combiner_forward(image_features.astype(jnp.bfloat16),
                             text_features.astype(jnp.bfloat16),
                             w_img, w_txt, b2d, embed_dim=E)
    out16 = jax.block_until_ready(out16)
    ref16 = (jnp.concatenate([image_features, text_features], axis=1)
             .astype(jnp.bfloat16).astype(jnp.float32)
             @ weight.astype(jnp.bfloat16).astype(jnp.float32).T + bias)
    assert out16.shape == (B, E)
    assert jnp.allclose(out16.astype(jnp.float32), ref16, atol=3e-2, rtol=3e-2)

    # ---- opt-in full-precision path ----
    w_img32, w_txt32, b2d32 = prepare_combiner_params(
        weight, bias, Dv, param_dtype=jnp.float32)
    out32 = combiner_forward(image_features, text_features,
                             w_img32, w_txt32, b2d32, embed_dim=E)
    out32 = jax.block_until_ready(out32)
    ref32 = (jnp.concatenate([image_features, text_features], axis=1)
             @ weight.T + bias)
    assert out32.shape == (B, E)
    assert jnp.allclose(out32, ref32, atol=1e-5, rtol=1e-5)

    print("KERNEL_OK")
</pallas_src>

<mosaic_0001>
module attributes {stable_mosaic.version = 11 : i64} {
  func.func @_combiner_kernel(%arg0: i32, %arg1: i32, %arg2: memref<8x32xbf16, #tpu.memory_space<vmem>>, %arg3: memref<8x32xbf16, #tpu.memory_space<vmem>>, %arg4: memref<32x128xbf16, #tpu.memory_space<vmem>>, %arg5: memref<32x128xbf16, #tpu.memory_space<vmem>>, %arg6: memref<1x128xf32, #tpu.memory_space<vmem>>, %arg7: memref<8x128xbf16, #tpu.memory_space<vmem>>) attributes {dimension_semantics = [#tpu.dimension_semantics<parallel>, #tpu.dimension_semantics<parallel>], iteration_bounds = array<i64: 1, 1>, scalar_prefetch = 0 : i64, scratch_operands = 0 : i64, tpu.core_type = #tpu.core_type<tc>, window_params = [{transform_indices = @transform_0, window_bounds = array<i64: 8, 32>}, {transform_indices = @transform_1, window_bounds = array<i64: 8, 32>}, {transform_indices = @transform_2, window_bounds = array<i64: 32, 128>}, {transform_indices = @transform_3, window_bounds = array<i64: 32, 128>}, {transform_indices = @transform_4, window_bounds = array<i64: 1, 128>}, {transform_indices = @transform_5, window_bounds = array<i64: 8, 128>}]} {
    %c0 = arith.constant 0 : index
    %c0_0 = arith.constant 0 : index
    %0 = vector.load %arg2[%c0, %c0_0] : memref<8x32xbf16, #tpu.memory_space<vmem>>, vector<8x32xbf16>
    %c0_1 = arith.constant 0 : index
    %c0_2 = arith.constant 0 : index
    %1 = vector.load %arg4[%c0_1, %c0_2] : memref<32x128xbf16, #tpu.memory_space<vmem>>, vector<32x128xbf16>
    %cst = arith.constant dense<0.000000e+00> : vector<8x128xf32>
    %2 = tpu.matmul %0, %1, %cst {dimension_numbers = #tpu.dot_dimension_numbers<[1], [0], [0], [1], [0, 0, 1, 1], [], []>} : vector<8x32xbf16>, vector<32x128xbf16>, vector<8x128xf32> -> vector<8x128xf32>
    %c0_3 = arith.constant 0 : index
    %c0_4 = arith.constant 0 : index
    %3 = vector.load %arg3[%c0_3, %c0_4] : memref<8x32xbf16, #tpu.memory_space<vmem>>, vector<8x32xbf16>
    %c0_5 = arith.constant 0 : index
    %c0_6 = arith.constant 0 : index
    %4 = vector.load %arg5[%c0_5, %c0_6] : memref<32x128xbf16, #tpu.memory_space<vmem>>, vector<32x128xbf16>
    %cst_7 = arith.constant dense<0.000000e+00> : vector<8x128xf32>
    %5 = tpu.matmul %3, %4, %cst_7 {dimension_numbers = #tpu.dot_dimension_numbers<[1], [0], [0], [1], [0, 0, 1, 1], [], []>} : vector<8x32xbf16>, vector<32x128xbf16>, vector<8x128xf32> -> vector<8x128xf32>
    %6 = arith.addf %2, %5 : vector<8x128xf32>
    %c0_8 = arith.constant 0 : index
    %c0_9 = arith.constant 0 : index
    %7 = vector.load %arg6[%c0_8, %c0_9] : memref<1x128xf32, #tpu.memory_space<vmem>>, vector<1x128xf32>
    %8 = vector.broadcast %7 : vector<1x128xf32> to vector<8x128xf32>
    %9 = arith.addf %6, %8 : vector<8x128xf32>
    %10 = arith.truncf %9 : vector<8x128xf32> to vector<8x128xbf16>
    %c0_10 = arith.constant 0 : index
    %c0_11 = arith.constant 0 : index
    %11 = vector.load %arg7[%c0_10, %c0_11] : memref<8x128xbf16, #tpu.memory_space<vmem>>, vector<8x128xbf16>
    tpu.vector_store %arg7[%c0_10, %c0_11], %10 {strides = array<i32>} : memref<8x128xbf16, #tpu.memory_space<vmem>>, vector<8x128xbf16>,
    return
  }
  func.func @transform_0(%arg0: i32, %arg1: i32) -> (i32, i32) {
    %c0_i32 = arith.constant 0 : i32
    %c0_i32_0 = arith.constant 0 : i32
    return %arg1, %c0_i32 : i32, i32
  }
  func.func @transform_1(%arg0: i32, %arg1: i32) -> (i32, i32) {
    %c0_i32 = arith.constant 0 : i32
    %c0_i32_0 = arith.constant 0 : i32
    return %arg1, %c0_i32 : i32, i32
  }
  func.func @transform_2(%arg0: i32, %arg1: i32) -> (i32, i32) {
    %c0_i32 = arith.constant 0 : i32
    %c0_i32_0 = arith.constant 0 : i32
    return %c0_i32, %arg0 : i32, i32
  }
  func.func @transform_3(%arg0: i32, %arg1: i32) -> (i32, i32) {
    %c0_i32 = arith.constant 0 : i32
    %c0_i32_0 = arith.constant 0 : i32
    return %c0_i32, %arg0 : i32, i32
  }
  func.func @transform_4(%arg0: i32, %arg1: i32) -> (i32, i32) {
    %c0_i32 = arith.constant 0 : i32
    %c0_i32_0 = arith.constant 0 : i32
    return %c0_i32, %arg0 : i32, i32
  }
  func.func @transform_5(%arg0: i32, %arg1: i32) -> (i32, i32) {
    %c0_i32 = arith.constant 0 : i32
    return %arg1, %arg0 : i32, i32
  }
}

</mosaic_0001>

<bundles_post_ra>
// kernel: combiner_forward.1
= control target key start
LH: loop header
LB: loop body
LE: loop exit
PB: predicated region body
PF: predicated region fallthrough
CT: control target
= control target key end

     0   :  { %10 = vsyncpa [#allocation3], 0  ;;  %s483_s0 = inlined_call_operand.hbm [shape: bf16[8,32], index: 0, kind: input, shape index: {}]   ;;  %s484_s1 = inlined_call_operand.hbm [shape: bf16[8,32], index: 1, kind: input, shape index: {}]   ;;  %s485_s2 = inlined_call_operand.hbm [shape: bf16[32,128], index: 2, kind: input, shape index: {}]   ;;  %s486_s3 = inlined_call_operand.hbm [shape: bf16[32,128], index: 3, kind: input, shape index: {}]   ;;  %s487_s4 = inlined_call_operand.vmem [shape: f32[1,128], index: 4, kind: input, shape index: {}]   ;;  %s488_s5 = inlined_call_operand.hbm [shape: bf16[8,128], index: 5, kind: output, shape index: {}]  }
   0x1   :  { %11 = vsyncpa [#allocation6], 0 }
   0x2   :  { %12 = vsyncpa [#allocation9], 0 }
   0x3   :  { %13 = vsyncpa [#allocation4], 0  ;;  %s381_s18 = smov [#allocation5]   ;;  %s382_s20 = smov [#allocation2]  }
   0x4   :  { %s30_s19 = sshll.u32 %s381_s18, 4  ;;  %s20_s21 = sshll.u32 %s382_s20, 4  ;;  %s31_s19 = int_to_ptr.vmem [resolvable:$true] %s30_s19  ;;  %s21_s21 = int_to_ptr.vmem [resolvable:$true] %s20_s21 }
   0x5   :  { %s263_s24 = scalar_lea.hbm %s484_s1, 64 }
   0x6   :  { %p264_p0 = scmp.ne.s32.totalorder %s484_s1, %s263_s24  ;;  %p267_p1 = scmp.lt.u32.totalorder %s263_s24, %s484_s1 }
   0x8   :  { %p269_p2 = pnand %p267_p1, %p264_p0 }
   0xa   :  { %272 = shalt.err (!%p269_p2)
}
   0xb   :  { %s273_s29 = scalar_lea.vmem %s31_s19, 64  ;;  %p278_p4 = scmp.lt.s32.totalorder %s31_s19, %s31_s19 }
   0xc   :  { %p274_p3 = scmp.ne.s32.totalorder %s31_s19, %s273_s29  ;;  %p279_p5 = scmp.lt.s32.totalorder %s273_s29, %s273_s29 }
   0xe   :  { %p280_p6 = por %p279_p5, %p278_p4 }
  0x10   :  { %p281_p7 = pnand %p280_p6, %p274_p3 }
  0x12   :  { %284 = shalt.err (!%p281_p7)
}
  0x13   :  { %33 = dma.hbm_to_vmem [thread:$0]  %s484_s1, 64, %s31_s19, [#allocation6]  }
  0x14   :  { %s285_s9 = scalar_lea.hbm %s483_s0, 64 }
  0x15   :  { %p286_p8 = scmp.ne.s32.totalorder %s483_s0, %s285_s9  ;;  %p289_p9 = scmp.lt.u32.totalorder %s285_s9, %s483_s0 }
  0x17   :  { %p291_p10 = pnand %p289_p9, %p286_p8 }
  0x19   :  { %294 = shalt.err (!%p291_p10)
}
  0x1a   :  { %s295_s14 = scalar_lea.vmem %s21_s21, 64  ;;  %p300_p12 = scmp.lt.s32.totalorder %s21_s21, %s21_s21 }
  0x1b   :  { %p296_p11 = scmp.ne.s32.totalorder %s21_s21, %s295_s14  ;;  %p301_p13 = scmp.lt.s32.totalorder %s295_s14, %s295_s14 }
  0x1d   :  { %p302_p0 = por %p301_p13, %p300_p12 }
  0x1f   :  { %p303_p1 = pnand %p302_p0, %p296_p11 }
  0x21   :  { %306 = shalt.err (!%p303_p1)
}
  0x22   :  { %23 = dma.hbm_to_vmem [thread:$0]  %s483_s0, 64, %s21_s21, [#allocation3]  }
  0x23   :  { %s383_s16 = smov [#allocation7]   ;;  %s307_s20 = scalar_lea.hbm %s485_s2, 256 }
  0x24   :  { %s39_s17 = sshll.u32 %s383_s16, 4  ;;  %p308_p2 = scmp.ne.s32.totalorder %s485_s2, %s307_s20  ;;  %s40_s17 = int_to_ptr.vmem [resolvable:$true] %s39_s17 }
  0x25   :  { %p311_p3 = scmp.lt.u32.totalorder %s307_s20, %s485_s2 }
  0x27   :  { %p313_p4 = pnand %p311_p3, %p308_p2 }
  0x29   :  { %316 = shalt.err (!%p313_p4)
}
  0x2a   :  { %s317_s26 = scalar_lea.vmem %s40_s17, 256  ;;  %p322_p6 = scmp.lt.s32.totalorder %s40_s17, %s40_s17 }
  0x2b   :  { %p318_p5 = scmp.ne.s32.totalorder %s40_s17, %s317_s26  ;;  %p323_p7 = scmp.lt.s32.totalorder %s317_s26, %s317_s26 }
  0x2d   :  { %p324_p8 = por %p323_p7, %p322_p6 }
  0x2f   :  { %p325_p9 = pnand %p324_p8, %p318_p5 }
  0x31   :  { %328 = shalt.err (!%p325_p9)
}
  0x32   :  { %s384_s0 = smov 64   ;;  %s385_s21 = smov 4  }
  0x33   :  { %45 = dma.hbm_to_vmem [thread:$0]  %s485_s2, 256, %s40_s17, [#allocation6], %s384_s0, %s384_s0, %s385_s21  }
  0x34   :  { %s386_s29 = smov [#allocation8]   ;;  %s329_s8 = scalar_lea.hbm %s486_s3, 256 }
  0x35   :  { %s51_s30 = sshll.u32 %s386_s29, 4  ;;  %p330_p10 = scmp.ne.s32.totalorder %s486_s3, %s329_s8  ;;  %s52_s30 = int_to_ptr.vmem [resolvable:$true] %s51_s30 }
  0x36   :  { %p333_p11 = scmp.lt.u32.totalorder %s329_s8, %s486_s3 }
  0x38   :  { %p335_p12 = pnand %p333_p11, %p330_p10 }
  0x3a   :  { %338 = shalt.err (!%p335_p12)
}
  0x3b   :  { %s339_s13 = scalar_lea.vmem %s52_s30, 256  ;;  %p344_p0 = scmp.lt.s32.totalorder %s52_s30, %s52_s30 }
  0x3c   :  { %p340_p13 = scmp.ne.s32.totalorder %s52_s30, %s339_s13  ;;  %p345_p1 = scmp.lt.s32.totalorder %s339_s13, %s339_s13 }
  0x3e   :  { %p346_p2 = por %p345_p1, %p344_p0 }
  0x40   :  { %p347_p3 = pnand %p346_p2, %p340_p13 }
  0x42   :  { %350 = shalt.err (!%p347_p3)
}
  0x43   :  { %57 = dma.hbm_to_vmem [thread:$0]  %s486_s3, 256, %s52_s30, [#allocation9], %s384_s0, %s384_s0, %s385_s21  }
  0x44   :  { %373 = dma.done.wait [#allocation3], 64  }
  0x45   :  { %374 = vsyncadd [#allocation3], 4294967232 }
  0x46   :  { %375 = dma.done.wait [#allocation6], 320  }
  0x47   :  { %376 = vsyncadd [#allocation6], 4294966976 }
  0x48   :  { %377 = dma.done.wait [#allocation9], 256  }
  0x49   :  { %378 = vsyncadd [#allocation9], 4294967040  ;;  %v387_v0 = vmov 0.0   ;;  %vm388_vm0 = vmmov 0   ;;  %v259_v1 = vld [vmem:[#allocation8] sm:$0xff]   ;;  %v260_v2 = vld [vmem:[#allocation7] sm:$0xff]  }
  0x4a   :  { %234 = vmatprep.subr.bf16.mxu0 %v387_v0  ;;  %242 = vmatprep.subr.bf16.mxu1 %v387_v0  ;;  %v261_v3 = vld [vmem:[#allocation8 + $0x8] sm:$0xff]   ;;  %v262_v4 = vld [vmem:[#allocation7 + $0x8] sm:$0xff]   ;;  %vm95_vm1 = vcmask 261120   ;;  %s389_s15 = smov [#allocation10]  }
  0x4b   :  { %238 = vmatprep.mubr.msk.bf16.mxu0 %vm388_vm0, %v387_v0  ;;  %246 = vmatprep.mubr.msk.bf16.mxu1 %vm388_vm0, %v387_v0  ;;  %v78_v5 = vld [vmem:[#allocation5] sm:$0xf]  ;;  %v73_v6 = vld [vmem:[#allocation2] sm:$0xf]  ;;  %s210_s16 = sshll.u32 %s389_s15, 4  ;;  %s211_s16 = int_to_ptr.vmem [resolvable:$true] %s210_s16 }
  0x4c   :  { %235 = vmatpush3.bf16.msra.mxu0 %v259_v1  ;;  %243 = vmatpush3.bf16.msra.mxu1 %v260_v2  ;;  %v227_v9 = vld [vmem:[%s487_s4] ss:$0 sm:$0xff]  ;;  %s351_s17 = scalar_lea.vmem %s211_s16, 64  ;;  %p356_p5 = scmp.lt.s32.totalorder %s211_s16, %s211_s16 }
  0x4d   :  { %236 = vmatprep.subr.bf16.mxu0 %v387_v0  ;;  %244 = vmatprep.subr.bf16.mxu1 %v387_v0  ;;  %p352_p4 = scmp.ne.s32.totalorder %s211_s16, %s351_s17  ;;  %p357_p6 = scmp.lt.s32.totalorder %s351_s17, %s351_s17 }
  0x4f   :  { %p358_p7 = por %p357_p6, %p356_p5 }
  0x50   :  { %237 = vmatpush3.bf16.msra.mxu0 %v261_v3  ;;  %245 = vmatpush3.bf16.msra.mxu1 %v262_v4 }
  0x51   :  { %p359_p8 = pnand %p358_p7, %p352_p4 }
  0x53   :  { %239 = vmatmul.mubr.msk.bf16.vlgmr.msra.gmra.mrb[0].mxu0 %vm95_vm1, %v78_v5  ;;  %247 = vmatmul.mubr.msk.bf16.vlgmr.msra.gmra.mrb[0].mxu1 %vm95_vm1, %v73_v6 }
 0x126   :  { %v133_v7 = vpop.f32.mrb[0].mxu0  ;;  %v188_v8 = vpop.f32.mrb[0].mxu1 }
 0x127   :  { %v240_v10 = vpop.f32.mrb[1].mxu0  ;;  %v189_v11 = vadd.f32 %v188_v8, %v133_v7  ;;  %v248_v12 = vpop.f32.mrb[1].mxu1 }
 0x128   :  { %v136_v13 = vpop.f32.mrb[2].mxu0  ;;  %v191_v14 = vpop.f32.mrb[2].mxu1 }
 0x129   :  { %v241_v15 = vpop.f32.mrb[3].mxu0  ;;  %v201_v16 = vadd.f32 %v227_v9, %v189_v11  ;;  %v249_v17 = vpop.f32.mrb[3].mxu1 }
 0x12b   :  { %v202_v18 = vpack.c.bf16 %v201_v16, %v201_v16 }
 0x12d   :  { %203 = vst [vmem:[#allocation10] sm:$0xf] %v202_v18 }
 0x12e   :  { %362 = shalt.err (!%p359_p8)
}
 0x12f   :  { %s363_s19 = scalar_lea.hbm %s488_s5, 64 }
 0x130   :  { %p364_p9 = scmp.ne.s32.totalorder %s488_s5, %s363_s19  ;;  %p367_p10 = scmp.lt.u32.totalorder %s363_s19, %s488_s5 }
 0x132   :  { %p369_p11 = pnand %p367_p10, %p364_p9 }
 0x134   :  { %372 = shalt.err (!%p369_p11)
}
 0x135   :  { %213 = dma.vmem_to_hbm [thread:$0]  %s211_s16, 64, %s488_s5, [#allocation4]  }
 0x136   :  { %379 = dma.done.wait [#allocation4], 64  }
 0x137   :  { %380 = vsyncadd [#allocation4], 4294967232 }
 0x138   :  { %217 = vsyncpa [#allocation3], 1 }
 0x139   :  { %218 = vsyncpa [#allocation6], 1 }
 0x13a   :  { %219 = vsyncpa [#allocation9], 1 }
 0x13b   :  { %220 = vsyncpa [#allocation4], 1 }

</bundles_post_ra>
